<compile_context>
chip_gen: v7x
topology: tpu7x:2x2x1
jax: 0.10.0
libtpu: 0.0.40
codegen_flags: <defaults>
</compile_context>

<pallas_src>
import jax
import jax.numpy as jnp
from jax.experimental import pallas as pl
from jax.experimental.pallas import tpu as pltpu

NEG_PAD = -1e9  # padded-class bias -> exp() underflows to exactly 0 in softmax


# ----------------------------------------------------------------------------
# Fused per-graph kernel (one grid step per graph):
#   GCN stack (BN folded) + WireframeGNN.fc + classification head + softmax
# ----------------------------------------------------------------------------
def _make_fused_kernel(n_gnn_layers, n_head_layers):
    """Ref layout (leading size-2 graph axis squeezed away by the BlockSpecs):
       a, x,
       (gcn_w, gcn_b) * n_gnn_layers          -- eval BatchNorm already folded
       fc_w_block * (n_gnn_layers + 1), fc_b  -- WireframeGNN.fc split by rows
       (head_w, head_b) * n_head_layers       -- last layer lane-padded to 128
       out                                     -- (N, 128) softmax score slab
    """

    def kernel(*refs):
        it = iter(refs)
        a_ref = next(it)
        x_ref = next(it)
        gnn_wb = [(next(it), next(it)) for _ in range(n_gnn_layers)]
        fcw_refs = [next(it) for _ in range(n_gnn_layers + 1)]
        fcb_ref = next(it)
        head_wb = [(next(it), next(it)) for _ in range(n_head_layers)]
        o_ref = next(it)

        a = a_ref[...]
        h = x_ref[...]

        # concat([x, h1, h2, ...]) @ fc_w  ==  sum_i feat_i @ fc_w_block_i
        acc = jnp.dot(h, fcw_refs[0][...], preferred_element_type=jnp.float32)
        for li, (w_ref, b_ref) in enumerate(gnn_wb):
            # GCNConv (+folded BatchNorm eval) + ReLU:
            #   h = relu(A_hat @ (h @ W') + b')
            xw = jnp.dot(h, w_ref[...], preferred_element_type=jnp.float32)
            h = jnp.maximum(
                jnp.dot(a, xw, preferred_element_type=jnp.float32) + b_ref[...],
                0.0)
            acc = acc + jnp.dot(h, fcw_refs[li + 1][...],
                                preferred_element_type=jnp.float32)

        # WireframeGNN.fc: Linear(sum_channels, feat_len) + ReLU
        h = jnp.maximum(acc + fcb_ref[...], 0.0)

        # classification head: Linear (+ReLU on all but the last layer)
        for li, (w_ref, b_ref) in enumerate(head_wb):
            h = jnp.dot(h, w_ref[...], preferred_element_type=jnp.float32) + b_ref[...]
            if li < n_head_layers - 1:
                h = jnp.maximum(h, 0.0)

        # numerically-stable EXACT softmax over the 128-lane slab; padded label
        # lanes carry a -1e9 bias so they contribute exactly 0.
        m = jnp.max(h, axis=-1, keepdims=True)
        e = jnp.exp(h - m)
        o_ref[...] = e / jnp.sum(e, axis=-1, keepdims=True)

    return kernel


def fused_graphs_forward(stacked, x, a_hat):
    """One pallas_call, grid=(2,) over [line graph, junction graph]."""
    n_gnn = len(stacked["gnn_w"])
    n_head = len(stacked["head_w"])
    n_graphs, n_nodes, _ = x.shape
    out_lanes = stacked["head_w"][-1].shape[-1]

    args = [a_hat, x]
    for w, b in zip(stacked["gnn_w"], stacked["gnn_b"]):
        args += [w, b]
    args += list(stacked["fc_w"])
    args.append(stacked["fc_b"])
    for w, b in zip(stacked["head_w"], stacked["head_b"]):
        args += [w, b]
    # TODO(synk): pack the many tiny weight/bias operands into one flat VMEM
    # slab with static ref.at[...] offsets to cut per-input DMA setup further.

    def _spec(arr):
        # Leading graph axis squeezed; index_map selects the current graph.
        return pl.BlockSpec((None,) + tuple(arr.shape[1:]),
                            lambda g: (g, 0, 0))

    flops = 0
    for w in stacked["gnn_w"]:
        flops += 2 * n_nodes * w.shape[1] * w.shape[2]      # h @ W'
        flops += 2 * n_nodes * n_nodes * w.shape[2]         # A_hat @ (h @ W')
    for w in list(stacked["fc_w"]) + list(stacked["head_w"]):
        flops += 2 * n_nodes * w.shape[1] * w.shape[2]
    flops *= n_graphs
    bytes_accessed = sum(int(v.size) * v.dtype.itemsize for v in args)
    bytes_accessed += n_graphs * n_nodes * out_lanes * 4

    return pl.pallas_call(
        _make_fused_kernel(n_gnn, n_head),
        grid=(n_graphs,),
        out_shape=jax.ShapeDtypeStruct((n_graphs, n_nodes, out_lanes),
                                       jnp.float32),
        in_specs=[_spec(v) for v in args],
        out_specs=pl.BlockSpec((None, n_nodes, out_lanes),
                               lambda g: (g, 0, 0)),
        compiler_params=pltpu.CompilerParams(
            dimension_semantics=("parallel",)),
        cost_estimate=pl.CostEstimate(
            flops=int(flops),
            transcendentals=int(n_graphs * n_nodes * out_lanes),
            bytes_accessed=int(bytes_accessed)),
    )(*args)


# ----------------------------------------------------------------------------
# Parameter construction (deterministic, synthetic) — BN folded, graphs padded
# ----------------------------------------------------------------------------
def _init_linear(key, fan_in, fan_out):
    k1, k2 = jax.random.split(key)
    bound = 1.0 / jnp.sqrt(jnp.float32(fan_in))
    w = jax.random.uniform(k1, (fan_in, fan_out), jnp.float32, -bound, bound)
    b = jax.random.uniform(k2, (1, fan_out), jnp.float32, -bound, bound)
    return w, b


def _init_bn(key, dim, eps=1e-5):
    k1, k2, k3, k4 = jax.random.split(key, 4)
    gamma = 1.0 + 0.1 * jax.random.uniform(k1, (1, dim), jnp.float32, -1.0, 1.0)
    beta = 0.1 * jax.random.uniform(k2, (1, dim), jnp.float32, -1.0, 1.0)
    run_mean = 0.1 * jax.random.normal(k3, (1, dim), jnp.float32)
    run_var = 1.0 + 0.1 * jax.random.uniform(k4, (1, dim), jnp.float32, 0.0, 1.0)
    scale = gamma / jnp.sqrt(run_var + eps)       # eval-mode BatchNorm -> affine
    shift = beta - run_mean * scale
    return scale, shift


def build_gnn_params(key, feat_len, n_layers):
    """WireframeGNN(feat_len, n_layers): GCNConv halves channels each layer,
    then fc: Linear(sum_of_channels, feat_len) + ReLU.  BatchNorm(eval) is
    folded into the conv weight/bias here."""
    layers = []
    cur = feat_len
    chans = [feat_len]
    for _ in range(n_layers):
        out = cur // 2
        key, k_conv, k_bn = jax.random.split(key, 3)
        w, b = _init_linear(k_conv, cur, out)
        scale, shift = _init_bn(k_bn, out)
        layers.append(dict(w=w * scale, b=b * scale + shift))   # BN folded
        cur = out
        chans.append(out)
    key, k_fc = jax.random.split(key)
    fc_w, fc_b = _init_linear(k_fc, sum(chans), feat_len)
    # Split fc weight rows per feature block so the fused kernel accumulates
    # concat(features) @ fc_w without an in-kernel concatenate.
    fc_w_blocks, off = [], 0
    for c in chans:
        fc_w_blocks.append(fc_w[off:off + c])
        off += c
    return dict(layers=layers, fc_w_blocks=fc_w_blocks, fc_b=fc_b)


def _pad2d(arr, rows, cols, value=0.0):
    if arr.shape == (rows, cols) and value == 0.0:
        return arr.astype(jnp.float32)
    out = jnp.full((rows, cols), value, jnp.float32)
    return out.at[:arr.shape[0], :arr.shape[1]].set(arr.astype(jnp.float32))


def build_stacked_params(line_gnn, junc_gnn, line_head, junc_head,
                         n_line_labels, n_junc_labels, out_lanes=128):
    """Zero-pad the junction-graph parameters up to the line-graph shapes, pad
    the final head layer to a lane-dense 128-wide output, and stack every
    operand on a leading axis of size 2 (0 = lines, 1 = junctions) so a single
    pallas_call with grid=(2,) selects per-graph weights via its index_map.
    Padded weight rows/cols are zero (inert through matmul + ReLU); padded
    label lanes of the final bias are -1e9 so softmax gives them score 0."""
    assert len(line_gnn["layers"]) == len(junc_gnn["layers"])
    assert len(line_head) >= len(junc_head)

    gnn_w, gnn_b = [], []
    for ll, jl in zip(line_gnn["layers"], junc_gnn["layers"]):
        r = max(ll["w"].shape[0], jl["w"].shape[0])
        c = max(ll["w"].shape[1], jl["w"].shape[1])
        gnn_w.append(jnp.stack([_pad2d(ll["w"], r, c), _pad2d(jl["w"], r, c)]))
        gnn_b.append(jnp.stack([_pad2d(ll["b"], 1, c), _pad2d(jl["b"], 1, c)]))

    fc_w = []
    for lw, jw in zip(line_gnn["fc_w_blocks"], junc_gnn["fc_w_blocks"]):
        r = max(lw.shape[0], jw.shape[0])
        c = max(lw.shape[1], jw.shape[1])
        fc_w.append(jnp.stack([_pad2d(lw, r, c), _pad2d(jw, r, c)]))
    feat_pad = max(line_gnn["fc_b"].shape[1], junc_gnn["fc_b"].shape[1])
    fc_b = jnp.stack([_pad2d(line_gnn["fc_b"], 1, feat_pad),
                      _pad2d(junc_gnn["fc_b"], 1, feat_pad)])

    # Equalize head depth by inserting identity layers before the junction
    # head's last layer (safe: the preceding activation is already ReLU'd, so
    # the extra ReLU after the identity is a no-op).  Assumes the line head's
    # hidden width equals feat_pad (true here: dim_fc).
    jh = list(junc_head)
    while len(jh) < len(line_head):
        jh.insert(len(jh) - 1, (jnp.eye(feat_pad, dtype=jnp.float32),
                                jnp.zeros((1, feat_pad), jnp.float32)))

    head_w, head_b = [], []
    n_head = len(line_head)
    for li in range(n_head):
        lw, lb = line_head[li]
        jw, jb = jh[li]
        r = max(lw.shape[0], jw.shape[0])
        if li < n_head - 1:
            c = max(lw.shape[1], jw.shape[1])
            head_w.append(jnp.stack([_pad2d(lw, r, c), _pad2d(jw, r, c)]))
            head_b.append(jnp.stack([_pad2d(lb, 1, c), _pad2d(jb, 1, c)]))
        else:
            c = out_lanes   # lane-dense final layer -> unmasked vector stores
            head_w.append(jnp.stack([_pad2d(lw, r, c), _pad2d(jw, r, c)]))
            lbp = jnp.full((1, c), NEG_PAD, jnp.float32).at[
                :, :n_line_labels].set(lb[:, :n_line_labels])
            jbp = jnp.full((1, c), NEG_PAD, jnp.float32).at[
                :, :n_junc_labels].set(jb[:, :n_junc_labels])
            head_b.append(jnp.stack([lbp, jbp]))

    return dict(gnn_w=gnn_w, gnn_b=gnn_b, fc_w=fc_w, fc_b=fc_b,
                head_w=head_w, head_b=head_b)


def normalized_adjacency(edge_index, n):
    """Dense GCN normalization: A_hat = D^-1/2 (A + I) D^-1/2, edges src->dst."""
    src, dst = edge_index[0], edge_index[1]
    a = jnp.zeros((n, n), jnp.float32).at[dst, src].set(1.0)
    a = jnp.maximum(a, jnp.eye(n, dtype=jnp.float32))   # add self loops
    deg = jnp.sum(a, axis=1)
    dinv = 1.0 / jnp.sqrt(deg)
    return a * dinv[:, None] * dinv[None, :]


# ----------------------------------------------------------------------------
# Forward pass (forward_test / eval path)
# ----------------------------------------------------------------------------
def classifier_forward_test(params, line_x, line_edge_index,
                            junc_x, junc_edge_index,
                            n_line_labels, n_junc_labels):
    stacked = params["stacked"]
    n_line = line_x.shape[0]
    n_junc = junc_x.shape[0]
    n_pad = max(n_line, n_junc)
    f_pad = stacked["gnn_w"][0].shape[1]

    # TODO(synk): the PyTorch forward_test skips the GNN (identity) when
    # edge_index is empty; that dynamic-shape branch is not replicated.
    a_line = normalized_adjacency(line_edge_index, n_line)
    a_junc = normalized_adjacency(junc_edge_index, n_junc)
    a_hat = jnp.stack([_pad2d(a_line, n_pad, n_pad),
                       _pad2d(a_junc, n_pad, n_pad)])
    x = jnp.stack([_pad2d(line_x, n_pad, f_pad),
                   _pad2d(junc_x, n_pad, f_pad)])

    slab = fused_graphs_forward(stacked, x, a_hat)        # (2, n_pad, 128)
    scores = slab[0, :n_line, :n_line_labels]
    junction_scores = slab[1, :n_junc, :n_junc_labels]

    # TODO(synk): these tiny post-processing ops could be folded into the
    # kernel epilogue, but their natural outputs are sub-(8,128) (masked
    # stores); kept inside the same jit as fused XLA ops instead.
    lines_label = jnp.argmax(scores, axis=1)
    junction_label = jnp.argmax(junction_scores, axis=1)

    lines_score_valid = 1.0 - scores[:, 0]
    valid_mask = lines_score_valid > 0.05
    lines_score_label = jnp.take_along_axis(
        scores, lines_label[:, None], axis=1)[:, 0]
    juncs_valid_score = 1.0 - junction_scores[:, 0]
    juncs_label_score = jnp.take_along_axis(
        junction_scores, junction_label[:, None], axis=1)[:, 0]

    # TODO(synk): dynamic-shape post-processing (boolean-mask compaction of
    # lines/scores and torch.unique(return_inverse=True) over line2junc idx)
    # has no static-shape Pallas/JAX equivalent; returning full tensors + mask.
    return dict(
        lines_score=scores,
        lines_label=lines_label,
        lines_valid_score=lines_score_valid,
        lines_label_score=lines_score_label,
        lines_valid_mask=valid_mask,
        juncs_score=junction_scores,
        juncs_label=junction_label,
        juncs_valid_score=juncs_valid_score,
        juncs_label_score=juncs_label_score,
    )


# ----------------------------------------------------------------------------
# Main
# ----------------------------------------------------------------------------
if __name__ == "__main__":
    # Small, self-consistent config:
    #   dim_loi=4, n_pts1=8  -> dim_loi*n_pts1 = 32 = dim_fc (line feature len)
    #   num_feats=16 (junction feature len), m = num_feats//4 = 4
    #   nbr_line_labels=3, nbr_junction_labels=2, GNN.LAYERS=JUNCTION_LAYERS=2
    DIM_FC = 32
    NUM_FEATS = 16
    NBR_LINE_LABELS = 3
    NBR_JUNCTION_LABELS = 2
    N_LINE, N_JUNC = 16, 8
    N_LINE_EDGES, N_JUNC_EDGES = 24, 12

    key = jax.random.PRNGKey(0)
    (k_lx, k_jx, k_le, k_je, k_lgnn, k_jgnn,
     k_fl1, k_fl2, k_fl3, k_fj1, k_fj2) = jax.random.split(key, 11)

    # Inputs (line graph + junction graph)
    line_x = jax.random.normal(k_lx, (N_LINE, DIM_FC), jnp.float32)
    junc_x = jax.random.normal(k_jx, (N_JUNC, NUM_FEATS), jnp.float32)
    line_edge_index = jax.random.randint(k_le, (2, N_LINE_EDGES), 0, N_LINE, jnp.int32)
    junc_edge_index = jax.random.randint(k_je, (2, N_JUNC_EDGES), 0, N_JUNC, jnp.int32)

    # Classification head parameters
    m = NUM_FEATS // 4
    w1, b1 = _init_linear(k_fl1, DIM_FC, DIM_FC)       # Linear(dim_loi*n_pts1, dim_fc)
    w2, b2 = _init_linear(k_fl2, DIM_FC, DIM_FC)       # Linear(dim_fc, dim_fc)
    w3, b3 = _init_linear(k_fl3, DIM_FC, NBR_LINE_LABELS)
    jw1, jb1 = _init_linear(k_fj1, NUM_FEATS, m)
    jw2, jb2 = _init_linear(k_fj2, m, NBR_JUNCTION_LABELS)

    # GNN parameters (BN folded), then pad+stack everything for the fused call
    line_gnn = build_gnn_params(k_lgnn, DIM_FC, n_layers=2)
    junc_gnn = build_gnn_params(k_jgnn, NUM_FEATS, n_layers=2)
    params = dict(stacked=build_stacked_params(
        line_gnn, junc_gnn,
        line_head=[(w1, b1), (w2, b2), (w3, b3)],
        junc_head=[(jw1, jb1), (jw2, jb2)],
        n_line_labels=NBR_LINE_LABELS,
        n_junc_labels=NBR_JUNCTION_LABELS))

    fwd = jax.jit(classifier_forward_test, static_argnums=(5, 6))
    out = fwd(params, line_x, line_edge_index, junc_x, junc_edge_index,
              NBR_LINE_LABELS, NBR_JUNCTION_LABELS)
    out = jax.tree_util.tree_map(jax.block_until_ready, out)

    assert out["lines_score"].shape == (N_LINE, NBR_LINE_LABELS)
    assert out["juncs_score"].shape == (N_JUNC, NBR_JUNCTION_LABELS)
    assert bool(jnp.all(jnp.isfinite(out["lines_score"])))
    assert bool(jnp.all(jnp.isfinite(out["juncs_score"])))
    # exact-division softmax -> tight row-sum tolerance
    assert jnp.allclose(jnp.sum(out["lines_score"], axis=1), 1.0, atol=1e-4)
    assert jnp.allclose(jnp.sum(out["juncs_score"], axis=1), 1.0, atol=1e-4)
    print("KERNEL_OK")
</pallas_src>

<mosaic_0001>
module attributes {stable_mosaic.version = 11 : i64} {
  func.func @kernel(%arg0: i32, %arg1: memref<1x16x16xf32, #tpu.memory_space<vmem>>, %arg2: memref<1x16x32xf32, #tpu.memory_space<vmem>>, %arg3: memref<1x32x16xf32, #tpu.memory_space<vmem>>, %arg4: memref<1x1x16xf32, #tpu.memory_space<vmem>>, %arg5: memref<1x16x8xf32, #tpu.memory_space<vmem>>, %arg6: memref<1x1x8xf32, #tpu.memory_space<vmem>>, %arg7: memref<1x32x32xf32, #tpu.memory_space<vmem>>, %arg8: memref<1x16x32xf32, #tpu.memory_space<vmem>>, %arg9: memref<1x8x32xf32, #tpu.memory_space<vmem>>, %arg10: memref<1x1x32xf32, #tpu.memory_space<vmem>>, %arg11: memref<1x32x32xf32, #tpu.memory_space<vmem>>, %arg12: memref<1x1x32xf32, #tpu.memory_space<vmem>>, %arg13: memref<1x32x32xf32, #tpu.memory_space<vmem>>, %arg14: memref<1x1x32xf32, #tpu.memory_space<vmem>>, %arg15: memref<1x32x128xf32, #tpu.memory_space<vmem>>, %arg16: memref<1x1x128xf32, #tpu.memory_space<vmem>>, %arg17: memref<1x16x128xf32, #tpu.memory_space<vmem>>) attributes {dimension_semantics = [#tpu.dimension_semantics<parallel>], iteration_bounds = array<i64: 2>, scalar_prefetch = 0 : i64, scratch_operands = 0 : i64, tpu.core_type = #tpu.core_type<tc>, window_params = [{transform_indices = @transform_0, window_bounds = array<i64: 1, 16, 16>}, {transform_indices = @transform_1, window_bounds = array<i64: 1, 16, 32>}, {transform_indices = @transform_2, window_bounds = array<i64: 1, 32, 16>}, {transform_indices = @transform_3, window_bounds = array<i64: 1, 1, 16>}, {transform_indices = @transform_4, window_bounds = array<i64: 1, 16, 8>}, {transform_indices = @transform_5, window_bounds = array<i64: 1, 1, 8>}, {transform_indices = @transform_6, window_bounds = array<i64: 1, 32, 32>}, {transform_indices = @transform_7, window_bounds = array<i64: 1, 16, 32>}, {transform_indices = @transform_8, window_bounds = array<i64: 1, 8, 32>}, {transform_indices = @transform_9, window_bounds = array<i64: 1, 1, 32>}, {transform_indices = @transform_10, window_bounds = array<i64: 1, 32, 32>}, {transform_indices = @transform_11, window_bounds = array<i64: 1, 1, 32>}, {transform_indices = @transform_12, window_bounds = array<i64: 1, 32, 32>}, {transform_indices = @transform_13, window_bounds = array<i64: 1, 1, 32>}, {transform_indices = @transform_14, window_bounds = array<i64: 1, 32, 128>}, {transform_indices = @transform_15, window_bounds = array<i64: 1, 1, 128>}, {transform_indices = @transform_16, window_bounds = array<i64: 1, 16, 128>}]} {
    %c0 = arith.constant 0 : index
    %c0_0 = arith.constant 0 : index
    %c0_1 = arith.constant 0 : index
    %0 = vector.load %arg1[%c0, %c0_0, %c0_1] : memref<1x16x16xf32, #tpu.memory_space<vmem>>, vector<1x16x16xf32>
    %1 = vector.shape_cast %0 : vector<1x16x16xf32> to vector<16x16xf32>
    %c0_2 = arith.constant 0 : index
    %c0_3 = arith.constant 0 : index
    %c0_4 = arith.constant 0 : index
    %2 = vector.load %arg2[%c0_2, %c0_3, %c0_4] : memref<1x16x32xf32, #tpu.memory_space<vmem>>, vector<1x16x32xf32>
    %3 = vector.shape_cast %2 : vector<1x16x32xf32> to vector<16x32xf32>
    %c0_5 = arith.constant 0 : index
    %c0_6 = arith.constant 0 : index
    %c0_7 = arith.constant 0 : index
    %4 = vector.load %arg7[%c0_5, %c0_6, %c0_7] : memref<1x32x32xf32, #tpu.memory_space<vmem>>, vector<1x32x32xf32>
    %5 = vector.shape_cast %4 : vector<1x32x32xf32> to vector<32x32xf32>
    %cst = arith.constant dense<0.000000e+00> : vector<16x32xf32>
    %6 = tpu.matmul %3, %5, %cst {dimension_numbers = #tpu.dot_dimension_numbers<[1], [0], [0], [1], [0, 0, 1, 1], [], []>} : vector<16x32xf32>, vector<32x32xf32>, vector<16x32xf32> -> vector<16x32xf32>
    %c0_8 = arith.constant 0 : index
    %c0_9 = arith.constant 0 : index
    %c0_10 = arith.constant 0 : index
    %7 = vector.load %arg3[%c0_8, %c0_9, %c0_10] : memref<1x32x16xf32, #tpu.memory_space<vmem>>, vector<1x32x16xf32>
    %8 = vector.shape_cast %7 : vector<1x32x16xf32> to vector<32x16xf32>
    %cst_11 = arith.constant dense<0.000000e+00> : vector<16x16xf32>
    %9 = tpu.matmul %3, %8, %cst_11 {dimension_numbers = #tpu.dot_dimension_numbers<[1], [0], [0], [1], [0, 0, 1, 1], [], []>} : vector<16x32xf32>, vector<32x16xf32>, vector<16x16xf32> -> vector<16x16xf32>
    %cst_12 = arith.constant dense<0.000000e+00> : vector<16x16xf32>
    %10 = tpu.matmul %1, %9, %cst_12 {dimension_numbers = #tpu.dot_dimension_numbers<[1], [0], [0], [1], [0, 0, 1, 1], [], []>} : vector<16x16xf32>, vector<16x16xf32>, vector<16x16xf32> -> vector<16x16xf32>
    %c0_13 = arith.constant 0 : index
    %c0_14 = arith.constant 0 : index
    %c0_15 = arith.constant 0 : index
    %11 = vector.load %arg4[%c0_13, %c0_14, %c0_15] : memref<1x1x16xf32, #tpu.memory_space<vmem>>, vector<1x1x16xf32>
    %12 = vector.shape_cast %11 : vector<1x1x16xf32> to vector<1x16xf32>
    %13 = vector.broadcast %12 : vector<1x16xf32> to vector<16x16xf32>
    %14 = arith.addf %10, %13 : vector<16x16xf32>
    %cst_16 = arith.constant 0.000000e+00 : f32
    %15 = vector.broadcast %cst_16 : f32 to vector<16x16xf32>
    %16 = arith.maximumf %14, %15 : vector<16x16xf32>
    %c0_17 = arith.constant 0 : index
    %c0_18 = arith.constant 0 : index
    %c0_19 = arith.constant 0 : index
    %17 = vector.load %arg8[%c0_17, %c0_18, %c0_19] : memref<1x16x32xf32, #tpu.memory_space<vmem>>, vector<1x16x32xf32>
    %18 = vector.shape_cast %17 : vector<1x16x32xf32> to vector<16x32xf32>
    %cst_20 = arith.constant dense<0.000000e+00> : vector<16x32xf32>
    %19 = tpu.matmul %16, %18, %cst_20 {dimension_numbers = #tpu.dot_dimension_numbers<[1], [0], [0], [1], [0, 0, 1, 1], [], []>} : vector<16x16xf32>, vector<16x32xf32>, vector<16x32xf32> -> vector<16x32xf32>
    %20 = arith.addf %6, %19 : vector<16x32xf32>
    %c0_21 = arith.constant 0 : index
    %c0_22 = arith.constant 0 : index
    %c0_23 = arith.constant 0 : index
    %21 = vector.load %arg5[%c0_21, %c0_22, %c0_23] : memref<1x16x8xf32, #tpu.memory_space<vmem>>, vector<1x16x8xf32>
    %22 = vector.shape_cast %21 : vector<1x16x8xf32> to vector<16x8xf32>
    %cst_24 = arith.constant dense<0.000000e+00> : vector<16x8xf32>
    %23 = tpu.matmul %16, %22, %cst_24 {dimension_numbers = #tpu.dot_dimension_numbers<[1], [0], [0], [1], [0, 0, 1, 1], [], []>} : vector<16x16xf32>, vector<16x8xf32>, vector<16x8xf32> -> vector<16x8xf32>
    %cst_25 = arith.constant dense<0.000000e+00> : vector<16x8xf32>
    %24 = tpu.matmul %1, %23, %cst_25 {dimension_numbers = #tpu.dot_dimension_numbers<[1], [0], [0], [1], [0, 0, 1, 1], [], []>} : vector<16x16xf32>, vector<16x8xf32>, vector<16x8xf32> -> vector<16x8xf32>
    %c0_26 = arith.constant 0 : index
    %c0_27 = arith.constant 0 : index
    %c0_28 = arith.constant 0 : index
    %25 = vector.load %arg6[%c0_26, %c0_27, %c0_28] : memref<1x1x8xf32, #tpu.memory_space<vmem>>, vector<1x1x8xf32>
    %26 = vector.shape_cast %25 : vector<1x1x8xf32> to vector<1x8xf32>
    %27 = vector.broadcast %26 : vector<1x8xf32> to vector<16x8xf32>
    %28 = arith.addf %24, %27 : vector<16x8xf32>
    %cst_29 = arith.constant 0.000000e+00 : f32
    %29 = vector.broadcast %cst_29 : f32 to vector<16x8xf32>
    %30 = arith.maximumf %28, %29 : vector<16x8xf32>
    %c0_30 = arith.constant 0 : index
    %c0_31 = arith.constant 0 : index
    %c0_32 = arith.constant 0 : index
    %31 = vector.load %arg9[%c0_30, %c0_31, %c0_32] : memref<1x8x32xf32, #tpu.memory_space<vmem>>, vector<1x8x32xf32>
    %32 = vector.shape_cast %31 : vector<1x8x32xf32> to vector<8x32xf32>
    %cst_33 = arith.constant dense<0.000000e+00> : vector<16x32xf32>
    %33 = tpu.matmul %30, %32, %cst_33 {dimension_numbers = #tpu.dot_dimension_numbers<[1], [0], [0], [1], [0, 0, 1, 1], [], []>} : vector<16x8xf32>, vector<8x32xf32>, vector<16x32xf32> -> vector<16x32xf32>
    %34 = arith.addf %20, %33 : vector<16x32xf32>
    %c0_34 = arith.constant 0 : index
    %c0_35 = arith.constant 0 : index
    %c0_36 = arith.constant 0 : index
    %35 = vector.load %arg10[%c0_34, %c0_35, %c0_36] : memref<1x1x32xf32, #tpu.memory_space<vmem>>, vector<1x1x32xf32>
    %36 = vector.shape_cast %35 : vector<1x1x32xf32> to vector<1x32xf32>
    %37 = vector.broadcast %36 : vector<1x32xf32> to vector<16x32xf32>
    %38 = arith.addf %34, %37 : vector<16x32xf32>
    %cst_37 = arith.constant 0.000000e+00 : f32
    %39 = vector.broadcast %cst_37 : f32 to vector<16x32xf32>
    %40 = arith.maximumf %38, %39 : vector<16x32xf32>
    %c0_38 = arith.constant 0 : index
    %c0_39 = arith.constant 0 : index
    %c0_40 = arith.constant 0 : index
    %41 = vector.load %arg11[%c0_38, %c0_39, %c0_40] : memref<1x32x32xf32, #tpu.memory_space<vmem>>, vector<1x32x32xf32>
    %42 = vector.shape_cast %41 : vector<1x32x32xf32> to vector<32x32xf32>
    %cst_41 = arith.constant dense<0.000000e+00> : vector<16x32xf32>
    %43 = tpu.matmul %40, %42, %cst_41 {dimension_numbers = #tpu.dot_dimension_numbers<[1], [0], [0], [1], [0, 0, 1, 1], [], []>} : vector<16x32xf32>, vector<32x32xf32>, vector<16x32xf32> -> vector<16x32xf32>
    %c0_42 = arith.constant 0 : index
    %c0_43 = arith.constant 0 : index
    %c0_44 = arith.constant 0 : index
    %44 = vector.load %arg12[%c0_42, %c0_43, %c0_44] : memref<1x1x32xf32, #tpu.memory_space<vmem>>, vector<1x1x32xf32>
    %45 = vector.shape_cast %44 : vector<1x1x32xf32> to vector<1x32xf32>
    %46 = vector.broadcast %45 : vector<1x32xf32> to vector<16x32xf32>
    %47 = arith.addf %43, %46 : vector<16x32xf32>
    %cst_45 = arith.constant 0.000000e+00 : f32
    %48 = vector.broadcast %cst_45 : f32 to vector<16x32xf32>
    %49 = arith.maximumf %47, %48 : vector<16x32xf32>
    %c0_46 = arith.constant 0 : index
    %c0_47 = arith.constant 0 : index
    %c0_48 = arith.constant 0 : index
    %50 = vector.load %arg13[%c0_46, %c0_47, %c0_48] : memref<1x32x32xf32, #tpu.memory_space<vmem>>, vector<1x32x32xf32>
    %51 = vector.shape_cast %50 : vector<1x32x32xf32> to vector<32x32xf32>
    %cst_49 = arith.constant dense<0.000000e+00> : vector<16x32xf32>
    %52 = tpu.matmul %49, %51, %cst_49 {dimension_numbers = #tpu.dot_dimension_numbers<[1], [0], [0], [1], [0, 0, 1, 1], [], []>} : vector<16x32xf32>, vector<32x32xf32>, vector<16x32xf32> -> vector<16x32xf32>
    %c0_50 = arith.constant 0 : index
    %c0_51 = arith.constant 0 : index
    %c0_52 = arith.constant 0 : index
    %53 = vector.load %arg14[%c0_50, %c0_51, %c0_52] : memref<1x1x32xf32, #tpu.memory_space<vmem>>, vector<1x1x32xf32>
    %54 = vector.shape_cast %53 : vector<1x1x32xf32> to vector<1x32xf32>
    %55 = vector.broadcast %54 : vector<1x32xf32> to vector<16x32xf32>
    %56 = arith.addf %52, %55 : vector<16x32xf32>
    %cst_53 = arith.constant 0.000000e+00 : f32
    %57 = vector.broadcast %cst_53 : f32 to vector<16x32xf32>
    %58 = arith.maximumf %56, %57 : vector<16x32xf32>
    %c0_54 = arith.constant 0 : index
    %c0_55 = arith.constant 0 : index
    %c0_56 = arith.constant 0 : index
    %59 = vector.load %arg15[%c0_54, %c0_55, %c0_56] : memref<1x32x128xf32, #tpu.memory_space<vmem>>, vector<1x32x128xf32>
    %60 = vector.shape_cast %59 : vector<1x32x128xf32> to vector<32x128xf32>
    %cst_57 = arith.constant dense<0.000000e+00> : vector<16x128xf32>
    %61 = tpu.matmul %58, %60, %cst_57 {dimension_numbers = #tpu.dot_dimension_numbers<[1], [0], [0], [1], [0, 0, 1, 1], [], []>} : vector<16x32xf32>, vector<32x128xf32>, vector<16x128xf32> -> vector<16x128xf32>
    %c0_58 = arith.constant 0 : index
    %c0_59 = arith.constant 0 : index
    %c0_60 = arith.constant 0 : index
    %62 = vector.load %arg16[%c0_58, %c0_59, %c0_60] : memref<1x1x128xf32, #tpu.memory_space<vmem>>, vector<1x1x128xf32>
    %63 = vector.shape_cast %62 : vector<1x1x128xf32> to vector<1x128xf32>
    %64 = vector.broadcast %63 : vector<1x128xf32> to vector<16x128xf32>
    %65 = arith.addf %61, %64 : vector<16x128xf32>
    %cst_61 = arith.constant dense<0xFF800000> : vector<16xf32>
    %66 = vector.multi_reduction <maximumf>, %65, %cst_61 [1] : vector<16x128xf32> to vector<16xf32>
    %67 = vector.shape_cast %66 : vector<16xf32> to vector<16x1xf32>
    %68 = vector.broadcast %67 : vector<16x1xf32> to vector<16x128xf32>
    %69 = arith.subf %65, %68 : vector<16x128xf32>
    %70 = math.exp %69 : vector<16x128xf32>
    %cst_62 = arith.constant dense<0.000000e+00> : vector<16xf32>
    %71 = vector.multi_reduction <add>, %70, %cst_62 [1] : vector<16x128xf32> to vector<16xf32>
    %72 = vector.shape_cast %71 : vector<16xf32> to vector<16x1xf32>
    %73 = vector.broadcast %72 : vector<16x1xf32> to vector<16x128xf32>
    %74 = arith.divf %70, %73 : vector<16x128xf32>
    %c0_63 = arith.constant 0 : index
    %c0_64 = arith.constant 0 : index
    %c0_65 = arith.constant 0 : index
    %75 = vector.load %arg17[%c0_63, %c0_64, %c0_65] : memref<1x16x128xf32, #tpu.memory_space<vmem>>, vector<1x16x128xf32>
    %76 = vector.shape_cast %75 : vector<1x16x128xf32> to vector<16x128xf32>
    %77 = vector.shape_cast %74 : vector<16x128xf32> to vector<1x16x128xf32>
    tpu.vector_store %arg17[%c0_63, %c0_64, %c0_65], %77 {strides = array<i32>} : memref<1x16x128xf32, #tpu.memory_space<vmem>>, vector<1x16x128xf32>,
    return
  }
  func.func @transform_0(%arg0: i32) -> (i32, i32, i32) {
    %c0_i32 = arith.constant 0 : i32
    %c0_i32_0 = arith.constant 0 : i32
    %c0_i32_1 = arith.constant 0 : i32
    return %arg0, %c0_i32, %c0_i32_0 : i32, i32, i32
  }
  func.func @transform_1(%arg0: i32) -> (i32, i32, i32) {
    %c0_i32 = arith.constant 0 : i32
    %c0_i32_0 = arith.constant 0 : i32
    %c0_i32_1 = arith.constant 0 : i32
    return %arg0, %c0_i32, %c0_i32_0 : i32, i32, i32
  }
  func.func @transform_2(%arg0: i32) -> (i32, i32, i32) {
    %c0_i32 = arith.constant 0 : i32
    %c0_i32_0 = arith.constant 0 : i32
    %c0_i32_1 = arith.constant 0 : i32
    return %arg0, %c0_i32, %c0_i32_0 : i32, i32, i32
  }
  func.func @transform_3(%arg0: i32) -> (i32, i32, i32) {
    %c0_i32 = arith.constant 0 : i32
    %c0_i32_0 = arith.constant 0 : i32
    %c0_i32_1 = arith.constant 0 : i32
    return %arg0, %c0_i32, %c0_i32_0 : i32, i32, i32
  }
  func.func @transform_4(%arg0: i32) -> (i32, i32, i32) {
    %c0_i32 = arith.constant 0 : i32
    %c0_i32_0 = arith.constant 0 : i32
    %c0_i32_1 = arith.constant 0 : i32
    return %arg0, %c0_i32, %c0_i32_0 : i32, i32, i32
  }
  func.func @transform_5(%arg0: i32) -> (i32, i32, i32) {
    %c0_i32 = arith.constant 0 : i32
    %c0_i32_0 = arith.constant 0 : i32
    %c0_i32_1 = arith.constant 0 : i32
    return %arg0, %c0_i32, %c0_i32_0 : i32, i32, i32
  }
  func.func @transform_6(%arg0: i32) -> (i32, i32, i32) {
    %c0_i32 = arith.constant 0 : i32
    %c0_i32_0 = arith.constant 0 : i32
    %c0_i32_1 = arith.constant 0 : i32
    return %arg0, %c0_i32, %c0_i32_0 : i32, i32, i32
  }
  func.func @transform_7(%arg0: i32) -> (i32, i32, i32) {
    %c0_i32 = arith.constant 0 : i32
    %c0_i32_0 = arith.constant 0 : i32
    %c0_i32_1 = arith.constant 0 : i32
    return %arg0, %c0_i32, %c0_i32_0 : i32, i32, i32
  }
  func.func @transform_8(%arg0: i32) -> (i32, i32, i32) {
    %c0_i32 = arith.constant 0 : i32
    %c0_i32_0 = arith.constant 0 : i32
    %c0_i32_1 = arith.constant 0 : i32
    return %arg0, %c0_i32, %c0_i32_0 : i32, i32, i32
  }
  func.func @transform_9(%arg0: i32) -> (i32, i32, i32) {
    %c0_i32 = arith.constant 0 : i32
    %c0_i32_0 = arith.constant 0 : i32
    %c0_i32_1 = arith.constant 0 : i32
    return %arg0, %c0_i32, %c0_i32_0 : i32, i32, i32
  }
  func.func @transform_10(%arg0: i32) -> (i32, i32, i32) {
    %c0_i32 = arith.constant 0 : i32
    %c0_i32_0 = arith.constant 0 : i32
    %c0_i32_1 = arith.constant 0 : i32
    return %arg0, %c0_i32, %c0_i32_0 : i32, i32, i32
  }
  func.func @transform_11(%arg0: i32) -> (i32, i32, i32) {
    %c0_i32 = arith.constant 0 : i32
    %c0_i32_0 = arith.constant 0 : i32
    %c0_i32_1 = arith.constant 0 : i32
    return %arg0, %c0_i32, %c0_i32_0 : i32, i32, i32
  }
  func.func @transform_12(%arg0: i32) -> (i32, i32, i32) {
    %c0_i32 = arith.constant 0 : i32
    %c0_i32_0 = arith.constant 0 : i32
    %c0_i32_1 = arith.constant 0 : i32
    return %arg0, %c0_i32, %c0_i32_0 : i32, i32, i32
  }
  func.func @transform_13(%arg0: i32) -> (i32, i32, i32) {
    %c0_i32 = arith.constant 0 : i32
    %c0_i32_0 = arith.constant 0 : i32
    %c0_i32_1 = arith.constant 0 : i32
    return %arg0, %c0_i32, %c0_i32_0 : i32, i32, i32
  }
  func.func @transform_14(%arg0: i32) -> (i32, i32, i32) {
    %c0_i32 = arith.constant 0 : i32
    %c0_i32_0 = arith.constant 0 : i32
    %c0_i32_1 = arith.constant 0 : i32
    return %arg0, %c0_i32, %c0_i32_0 : i32, i32, i32
  }
  func.func @transform_15(%arg0: i32) -> (i32, i32, i32) {
    %c0_i32 = arith.constant 0 : i32
    %c0_i32_0 = arith.constant 0 : i32
    %c0_i32_1 = arith.constant 0 : i32
    return %arg0, %c0_i32, %c0_i32_0 : i32, i32, i32
  }
  func.func @transform_16(%arg0: i32) -> (i32, i32, i32) {
    %c0_i32 = arith.constant 0 : i32
    %c0_i32_0 = arith.constant 0 : i32
    %c0_i32_1 = arith.constant 0 : i32
    return %arg0, %c0_i32, %c0_i32_0 : i32, i32, i32
  }
}

</mosaic_0001>

<bundles_post_ra>
// kernel: classifier_forward_test.1
= control target key start
LH: loop header
LB: loop body
LE: loop exit
PB: predicated region body
PF: predicated region fallthrough
CT: control target
= control target key end

     0   :  { %s2270_s21 = smov 0   ;;  %s2375_s0 = inlined_call_operand.vmem [shape: f32[2,16,16], index: 0, kind: input, shape index: {}]   ;;  %s2376_s1 = inlined_call_operand.vmem [shape: f32[2,16,32], index: 1, kind: input, shape index: {}]   ;;  %s2377_s2 = inlined_call_operand.vmem [shape: f32[2,32,16], index: 2, kind: input, shape index: {}]   ;;  %s2378_s3 = inlined_call_operand.vmem [shape: f32[2,1,16], index: 3, kind: input, shape index: {}]   ;;  %s2379_s4 = inlined_call_operand.vmem [shape: f32[2,16,8], index: 4, kind: input, shape index: {}]   ;;  %s2380_s5 = inlined_call_operand.vmem [shape: f32[2,1,8], index: 5, kind: input, shape index: {}]   ;;  %s2381_s6 = inlined_call_operand.vmem [shape: f32[2,32,32], index: 6, kind: input, shape index: {}]   ;;  %s2382_s7 = inlined_call_operand.vmem [shape: f32[2,16,32], index: 7, kind: input, shape index: {}]   ;;  %s2383_s8 = inlined_call_operand.vmem [shape: f32[2,8,32], index: 8, kind: input, shape index: {}]   ;;  %s2384_s9 = inlined_call_operand.vmem [shape: f32[2,1,32], index: 9, kind: input, shape index: {}]   ;;  %s2385_s10 = inlined_call_operand.vmem [shape: f32[2,32,32], index: 10, kind: input, shape index: {}]   ;;  %s2386_s11 = inlined_call_operand.vmem [shape: f32[2,1,32], index: 11, kind: input, shape index: {}]   ;;  %s2387_s12 = inlined_call_operand.vmem [shape: f32[2,32,32], index: 12, kind: input, shape index: {}]   ;;  %s2388_s13 = inlined_call_operand.vmem [shape: f32[2,1,32], index: 13, kind: input, shape index: {}]   ;;  %s2389_s14 = inlined_call_operand.vmem [shape: f32[2,32,128], index: 14, kind: input, shape index: {}]   ;;  %s2390_s15 = inlined_call_operand.vmem [shape: f32[2,1,128], index: 15, kind: input, shape index: {}]   ;;  %s2391_s16 = inlined_call_operand.vmem [shape: f32[2,16,128], index: 16, kind: output, shape index: {}]  }
   0x1   :  { %2392 = sst [smem:[#allocation2_spill]] %s2375_s0 }
   0x2 LB: > { %s1900_s22 = sadd.s32 4294967295, %s2183_s21   ;;  %p1904_p0 = scmp.ge.s32.totalorder %s2183_s21, 1  ;;  %s2183_s21 = sphi %s2270_s21, %s26_s21  }
   0x3   : > { %p599_p1 = scmp.lt.s32.totalorder %s2183_s21, 3 }
   0x5   : > { %p600_p2 = pnand %p1904_p0, %p599_p1 }
   0x6   : > { %p711_p3 = scmp.lt.s32.totalorder (!%p600_p2), %s1900_s22, 1  ;;  %vm795_vm0 = vcmask (!%p600_p2), 261120   ;;  %s2393_s18 = sld [smem:[#allocation2_spill]] (!%p600_p2)  ;;  %vm884_vm1 = vcmask (!%p600_p2), 130048   ;;  %vm1288_vm2 = vcmask (!%p600_p2), 64512  }
   0x7   : > { %603 = sbr.rel (%p600_p2) target bundleno = 2088 (0x828), region = 84 }
   0xe   : > { %s2395_s22 = smov (!%p711_p3, %s1900_s22), 1 }
   0xf   : > { %s2281_s23 = sshll.u32 %s2395_s22, 5  ;;  %s2284_s24 = sshll.u32 %s2395_s22, 4 }
  0x10   : > { %s725_s27 = scalar_lea.vmem %s2377_s2, %s2281_s23  ;;  %s720_s30 = scalar_lea.vmem %s2376_s1, %s2284_s24 }
  0x11   : > { %v791_v0 = vld [vmem:[%s725_s27] sm:$0xff]  ;;  %v792_v1 = vld [vmem:[%s725_s27 + $0x8] sm:$0xff]  ;;  %v793_v2 = vld [vmem:[%s725_s27 + $0x10] sm:$0xff]  ;;  %s715_s19 = scalar_lea.vmem %s2393_s18, %s2284_s24  ;;  %s746_s26 = scalar_lea.vmem %s2382_s7, %s2284_s24 }
  0x12   : > { %v2101_v3 = vpack.c.bf16 %v792_v1, %v791_v0  ;;  %v794_v4 = vld [vmem:[%s725_s27 + $0x18] sm:$0xff]  ;;  %v785_v5 = vld [vmem:[%s720_s30] sm:$0xff]  ;;  %v786_v7 = vld [vmem:[%s720_s30 + $0x8] sm:$0xff]  ;;  %s733_s29 = scalar_lea.vmem %s2379_s4, %s2284_s24  ;;  %s728_s17 = scalar_lea.vmem %s2378_s3, %s2395_s22 }
  0x13   : > { %v2105_v6 = vpack.c.bf16 %v794_v4, %v793_v2  ;;  %2021 = vmatprep.mubr.msk.f32.mxu0 %vm795_vm0, %v785_v5  ;;  %v783_v8 = vld [vmem:[%s715_s19] sm:$0xff]  ;;  %v784_v12 = vld [vmem:[%s715_s19 + $0x8] sm:$0xff]  ;;  %s741_s20 = scalar_lea.vmem %s2381_s6, %s2281_s23  ;;  %s1917_s25 = sshll.u32 %s2395_s22, 3 }
  0x14   : > { %2102 = vmatprep.subr.bf16.mxu0 %v2101_v3  ;;  %2028 = vmatprep.mubr.msk.f32.mxu1 %vm884_vm1, %v783_v8  ;;  %v968_v13 = vld [vmem:[%s746_s26] sm:$0xff]  ;;  %v969_v14 = vld [vmem:[%s746_s26 + $0x8] sm:$0xff]  ;;  %v789_v28 = vld [vmem:[%s741_s20 + $0x10] sm:$0xff]  ;;  %s750_s28 = scalar_lea.vmem %s2383_s8, %s1917_s25  ;;  %s758_s0 = scalar_lea.vmem %s2385_s10, %s2281_s23 }
  0x15   : > { %2104 = vmatpush3.bf16.msra.mxu0 %v2101_v3  ;;  %v2113_v15 = vpack.c.bf16 %v969_v14, %v968_v13  ;;  %v1126_v16 = vld [vmem:[%s733_s29] sm:$0xff]  ;;  %v1127_v17 = vld [vmem:[%s733_s29 + $0x8] sm:$0xff]  ;;  %v790_v30 = vld [vmem:[%s741_s20 + $0x18] sm:$0xff]  ;;  %s736_s19 = scalar_lea.vmem %s2380_s5, %s2395_s22  ;;  %s766_s26 = scalar_lea.vmem %s2387_s12, %s2281_s23 }
  0x16   : > { %2106 = vmatprep.subr.bf16.mxu0 %v2105_v6  ;;  %v2125_v18 = vpack.c.bf16 %v1127_v17, %v1126_v16  ;;  %v1928_v19 = vld [vmem:[%s728_s17] ss:$0 sm:$0xff]  ;;  %v788_v27 = vld [vmem:[%s741_s20 + $0x8] sm:$0xff]  ;;  %v2121_v31 = vpack.c.bf16 %v790_v30, %v789_v28  ;;  %v1385_v46 = vld [vmem:[%s758_s0 + $0x10] sm:$0xff]  ;;  %s753_s29 = scalar_lea.vmem %s2384_s9, %s2395_s22  ;;  %s774_s17 = scalar_lea.vmem %s2389_s14, %s2281_s23 }
  0x17   : > { %v787_v26 = vld [vmem:[%s741_s20] sm:$0xff]  ;;  %v1384_v37 = vld [vmem:[%s758_s0 + $0x8] sm:$0xff]  ;;  %v1386_v47 = vld [vmem:[%s758_s0 + $0x18] sm:$0xff]  ;;  %s761_s20 = scalar_lea.vmem %s2386_s11, %s2395_s22 }
  0x18   : > { %v2117_v29 = vpack.c.bf16 %v788_v27, %v787_v26  ;;  %v1287_v32 = vld [vmem:[%s750_s28] sm:$0xff]  ;;  %v2137_v48 = vpack.c.bf16 %v1386_v47, %v1385_v46  ;;  %v1478_v50 = vld [vmem:[%s766_s26 + $0x8] sm:$0xff]  ;;  %v1479_v59 = vld [vmem:[%s766_s26 + $0x10] sm:$0xff] }
  0x19   : > { %2108 = vmatpush3.bf16.msra.mxu0 %v2105_v6  ;;  %v1383_v36 = vld [vmem:[%s758_s0] sm:$0xff]  ;;  %v1480_v60 = vld [vmem:[%s766_s26 + $0x18] sm:$0xff]  ;;  %v1572_v63 = vld [vmem:[%s774_s17 + $0x8] sm:$0xff]  ;;  %s782_s0 = scalar_lea.vmem %s2391_s16, %s2284_s24 }
  0x1a   : > { %2126 = vmatprep.subr.bf16.mxu0 %v2125_v18  ;;  %v2133_v38 = vpack.c.bf16 %v1384_v37, %v1383_v36  ;;  %v1937_v39 = vld [vmem:[%s736_s19] ss:$0 sm:$0xff]  ;;  %v2145_v61 = vpack.c.bf16 %v1480_v60, %v1479_v59 }
  0x1b   : > { %v1477_v49 = vld [vmem:[%s766_s26] sm:$0xff]  ;;  %s769_s26 = scalar_lea.vmem %s2388_s13, %s2395_s22 }
  0x1c   : > { %2022 = vmatmul.mubr.msk.f32.vlgmr.msra.gmra.mrb[0].mxu0 %vm795_vm0, %v786_v7  ;;  %v2141_v51 = vpack.c.bf16 %v1478_v50, %v1477_v49  ;;  %v1942_v52 = vld [vmem:[%s753_s29] ss:$0 sm:$0xff]  ;;  %s777_s29 = scalar_lea.vmem %s2390_s15, %s2395_s22 }
  0x1d   : > { %2128 = vmatpush3.bf16.msra.mxu0 %v2125_v18  ;;  %v1571_v62 = vld [vmem:[%s774_s17] sm:$0xff] }
  0x1e   : > { %v2149_v0 = vpack.c.bf16 %v1572_v63, %v1571_v62  ;;  %v1943_v1 = vld [vmem:[%s761_s20] ss:$0 sm:$0xff] }
  0x1f   : > { %v1949_v18 = vld [vmem:[%s777_s29] ss:$0 sm:$0xff] }
  0xef   : > { %v2023_v9 = vpop.f32.mrb[0].mxu0 }
  0xf0   : > { %v868_v10 = vpop.f32.mrb[1].mxu0 }
  0xf1   : > { %v2109_v11 = vpack.c.bf16 %v2023_v9, %v868_v10  ;;  %v1574_v9 = vld [vmem:[%s774_s17 + $0x18] sm:$0xff] }
  0xf3   : > { %2110 = vmatprep.subr.bf16.mxu1 %v2109_v11 }
  0xf4   : > { %2112 = vmatpush3.bf16.msra.mxu1 %v2109_v11  ;;  %v1946_v11 = vld [vmem:[%s769_s26] ss:$0 sm:$0xff] }
  0xf5   : > { %2114 = vmatprep.subr.bf16.mxu1 %v2113_v15 }
  0xf7   : > { %2029 = vmatmul.mubr.msk.f32.vlgmr.msra.gmra.mrb[0].mxu1 %vm884_vm1, %v784_v12 }
  0xf8   : > { %2116 = vmatpush3.bf16.msra.mxu1 %v2113_v15 }
  0xf9   : > { %2118 = vmatprep.subr.bf16.mxu1 %v2117_v29 }
 0x1ca   : > { %v2030_v20 = vpop.f32.mrb[0].mxu1 }
 0x1cb   : > { %v963_v21 = vadd.f32 %v2030_v20, %v1928_v19  ;;  %v957_v22 = vpop.f32.mrb[1].mxu1 }
 0x1cc   : > { %v958_v23 = vadd.f32 %v1928_v19, %v957_v22 }
 0x1cd   : > { %v967_v25 = vmax.f32 %v963_v21, 0.0 }
 0x1ce   : > { %v966_v24 = vmax.f32 %v958_v23, 0.0 }
 0x1d0   : > { %2035 = vmatprep.mubr.msk.f32.mxu1 %vm884_vm1, %v966_v24  ;;  %2053 = vmatprep.mubr.msk.f32.mxu0 %vm884_vm1, %v966_v24 }
 0x1d1   : > { %2036 = vmatmul.mubr.msk.f32.vlgmr.msra.gmra.mrb[2].mxu1 %vm884_vm1, %v967_v25  ;;  %2054 = vmatmul.mubr.msk.f32.vlgmr.msra.gmra.mrb[2].mxu0 %vm884_vm1, %v967_v25 }
 0x1d2   : > { %2060 = vmatprep.mubr.msk.f32.mxu0 %vm884_vm1, %v783_v8  ;;  %2046 = vmatprep.mubr.msk.f32.mxu1 %vm795_vm0, %v785_v5  ;;  %v1573_v8 = vld [vmem:[%s774_s17 + $0x10] sm:$0xff] }
 0x1d3   : > { %2120 = vmatpush3.bf16.msra.mxu1 %v2117_v29  ;;  %v2153_v10 = vpack.c.bf16 %v1574_v9, %v1573_v8 }
 0x1d4   : > { %2122 = vmatprep.subr.bf16.mxu1 %v2121_v31 }
 0x1d7   : > { %2124 = vmatpush3.bf16.msra.mxu1 %v2121_v31 }
 0x1d8   : > { %2063 = vmatprep.subr.mxu1 %v1287_v32 }
 0x1da   : > { %2047 = vmatmul.mubr.msk.f32.vlgmr.msra.gmra.mrb[2].mxu1 %vm795_vm0, %v786_v7 }
 0x1db   : > { %2064 = vmatpush3.msra.mxu1 %v1287_v32 }
 0x1dc   : > { %2142 = vmatprep.subr.bf16.mxu1 %v2141_v51 }
 0x2a4   : > { %v2055_v33 = vpop.f32.mrb[2].mxu0 }
 0x2a5   : > { %v1194_v34 = vpop.f32.mrb[3].mxu0 }
 0x2a6   : > { %v2129_v35 = vpack.c.bf16 %v2055_v33, %v1194_v34 }
 0x2a8   : > { %2130 = vmatprep.subr.bf16.mxu0 %v2129_v35 }
 0x2a9   : > { %2132 = vmatpush3.bf16.msra.mxu0 %v2129_v35 }
 0x2aa   : > { %2134 = vmatprep.subr.bf16.mxu0 %v2133_v38 }
 0x2ac   : > { %2061 = vmatmul.mubr.msk.f32.vlgmr.msra.gmra.mrb[4].mxu0 %vm884_vm1, %v784_v12 }
 0x2ad   : > { %2136 = vmatpush3.bf16.msra.mxu0 %v2133_v38 }
 0x2ae   : > { %2138 = vmatprep.subr.bf16.mxu0 %v2137_v48 }
 0x2b1   : > { %2140 = vmatpush3.bf16.msra.mxu0 %v2137_v48 }
 0x2b2   : > { %2150 = vmatprep.subr.bf16.mxu0 %v2149_v0 }
 0x37f   : > { %v2062_v40 = vpop.f32.mrb[4].mxu0 }
 0x380   : > { %v1282_v41 = vadd.f32 %v2062_v40, %v1937_v39  ;;  %v1276_v42 = vpop.f32.mrb[5].mxu0 }
 0x381   : > { %v1277_v43 = vadd.f32 %v1937_v39, %v1276_v42 }
 0x382   : > { %v1286_v45 = vmax.f32 %v1282_v41, 0.0 }
 0x383   : > { %v1285_v44 = vmax.f32 %v1277_v43, 0.0 }
 0x385   : > { %2065 = vmatprep.mubr.msk.f32.mxu1 %vm1288_vm2, %v1285_v44 }
 0x386   : > { %2066 = vmatmul.mubr.msk.f32.vlgmr.msra.gmra.mrb[2].mxu1 %vm1288_vm2, %v1286_v45 }
 0x387   : > { %2144 = vmatpush3.bf16.msra.mxu1 %v2141_v51 }
 0x388   : > { %2146 = vmatprep.subr.bf16.mxu1 %v2145_v61 }
 0x38b   : > { %2148 = vmatpush3.bf16.msra.mxu1 %v2145_v61 }
 0x459   : > { %v2067_v53 = vpop.f32.mrb[2].mxu1 }
 0x45a   : > { %v1380_v54 = vadd.f32 %v2067_v53, %v1942_v52  ;;  %v1361_v55 = vpop.f32.mrb[3].mxu1 }
 0x45b   : > { %v1379_v56 = vadd.f32 %v1942_v52, %v1361_v55 }
 0x45c   : > { %v1382_v58 = vmax.f32 %v1380_v54, 0.0 }
 0x45d   : > { %v1381_v57 = vmax.f32 %v1379_v56, 0.0 }
 0x45f   : > { %2076 = vmatprep.mubr.msk.f32.mxu0 %vm795_vm0, %v1381_v57 }
 0x460   : > { %2077 = vmatmul.mubr.msk.f32.vlgmr.msra.gmra.mrb[6].mxu0 %vm795_vm0, %v1382_v58 }
 0x461   : > { %2152 = vmatpush3.bf16.msra.mxu0 %v2149_v0 }
 0x462   : > { %2154 = vmatprep.subr.bf16.mxu0 %v2153_v10 }
 0x465   : > { %2156 = vmatpush3.bf16.msra.mxu0 %v2153_v10 }
 0x533   : > { %v2078_v2 = vpop.f32.mrb[6].mxu0 }
 0x534   : > { %v1472_v3 = vadd.f32 %v2078_v2, %v1943_v1  ;;  %v1466_v4 = vpop.f32.mrb[7].mxu0 }
 0x535   : > { %v1467_v5 = vadd.f32 %v1943_v1, %v1466_v4 }
 0x536   : > { %v1476_v7 = vmax.f32 %v1472_v3, 0.0 }
 0x537   : > { %v1475_v6 = vmax.f32 %v1467_v5, 0.0 }
 0x539   : > { %2087 = vmatprep.mubr.msk.f32.mxu1 %vm795_vm0, %v1475_v6 }
 0x53a   : > { %2088 = vmatmul.mubr.msk.f32.vlgmr.msra.gmra.mrb[4].mxu1 %vm795_vm0, %v1476_v7 }
 0x60d   : > { %v2089_v12 = vpop.f32.mrb[4].mxu1 }
 0x60e   : > { %v1566_v13 = vadd.f32 %v2089_v12, %v1946_v11  ;;  %v1560_v14 = vpop.f32.mrb[5].mxu1 }
 0x60f   : > { %v1561_v15 = vadd.f32 %v1946_v11, %v1560_v14 }
 0x610   : > { %v1570_v17 = vmax.f32 %v1566_v13, 0.0 }
 0x611   : > { %v1569_v16 = vmax.f32 %v1561_v15, 0.0 }
 0x613   : > { %2098 = vmatprep.mubr.msk.f32.mxu0 %vm795_vm0, %v1569_v16 }
 0x614   : > { %2099 = vmatmul.mubr.msk.f32.vlgmr.msra.gmra.mrb[8].mxu0 %vm795_vm0, %v1570_v17 }
 0x6e7   : > { %v2100_v19 = vpop.f32.mrb[8].mxu0 }
 0x6e8   : > { %v1654_v20 = vpop.f32.mrb[9].mxu0  ;;  %v1660_v22 = vadd.f32 %v2100_v19, %v1949_v18 }
 0x6e9   : > { %v1655_v21 = vadd.f32 %v1949_v18, %v1654_v20 }
 0x6eb   : > { %1663 = vmax.xlane.f32.xlu0 %v1655_v21 }
 0x6ef   : > { %1665 = vmax.xlane.f32.xlu0 %v1660_v22 }
 0x778   : > { %v1664_v23 = vpop.xlane.xlu0 %1663 }
 0x779   : > { %v1667_v24 = vsub.f32 %v1655_v21, %v1664_v23 }
 0x77b   : > { %v1669_v25 = vmul.f32 1.442695, %v1667_v24 }
 0x77c   : > { %v1666_v26 = vpop.xlane.xlu0 %1665 }
 0x77d   : > { %2169 = vpow2.f32 %v1669_v25  ;;  %v1668_v27 = vsub.f32 %v1660_v22, %v1666_v26 }
 0x77f   : > { %v1671_v28 = vmul.f32 1.442695, %v1668_v27 }
 0x781   : > { %2171 = vpow2.f32 %v1671_v28 }
 0x787   : > { %v2170_v29 = vpop.eup %2169 }
 0x788   : > { %1673 = vadd.xlane.f32.xlu1 %v2170_v29 }
 0x78b   : > { %v2172_v30 = vpop.eup %2171 }
 0x78c   : > { %1675 = vadd.xlane.f32.xlu1 %v2172_v30 }
 0x815   : > { %v1674_v31 = vpop.xlane.xlu1 %1673 }
 0x816   : > { %2173 = vrcp.f32 %v1674_v31 }
 0x819   : > { %v1676_v32 = vpop.xlane.xlu1 %1675 }
 0x81a   : > { %2175 = vrcp.f32 %v1676_v32 }
 0x820   : > { %v2174_v33 = vpop.eup %2173 }
 0x821   : > { %v1678_v34 = vmul.f32 %v2174_v33, %v2170_v29 }
 0x823   : > { %1681 = vst [vmem:[%s782_s0] sm:$0xff] %v1678_v34 }
 0x824   : > { %v2176_v35 = vpop.eup %2175 }
 0x825   : > { %v1680_v36 = vmul.f32 %v2176_v35, %v2172_v30 }
 0x827   : > { %1682 = vst [vmem:[%s782_s0 + $0x8] sm:$0xff] %v1680_v36 }
 0x828 PF: > { %s26_s21 = sadd.s32 1, %s2183_s21  }
 0x829   : > { %p23_p4 = scmp.ge.s32.totalorder %s26_s21, 4  }
 0x82b   :  { %25 = sbr.rel (!%p23_p4) target bundleno = 2 (0x2), region = 159 }

</bundles_post_ra>
